<compile_context>
chip_gen: v7x
topology: tpu7x:2x2x1
jax: 0.10.0
libtpu: 0.0.40
codegen_flags: <defaults>
</compile_context>

<pallas_src>
import functools

import jax
import jax.numpy as jnp
from jax.experimental import pallas as pl
from jax.experimental.pallas import tpu as pltpu


def _round_up(x, m):
    return ((x + m - 1) // m) * m


def _attn_lstm_kernel(tok_ref,                 # SMEM (1,) int32 (scalar prefetch)
                      emb_ref,                 # VMEM (1, 1, Hk) bf16 (gathered row)
                      h_ref, c_ref,            # VMEM (2, Hp) f32
                      enc_ref,                 # VMEM (Lp, Hp) f32
                      w0_ref, b0_ref,          # VMEM (2Hk, 4Hp) bf16, (1, 4Hp) f32
                      w1_ref, b1_ref,
                      hc_ref,                  # out (4, Hp) f32  [h0; h1; c0; c1]
                      attn_ref,                # out (1, Lp) f32
                      h1b_ref,                 # out (1, Hk) bf16 (for projection kernel)
                      *, hk, hp, seq_len):
    del tok_ref  # consumed by the embedding BlockSpec index_map

    enc = enc_ref[...]                           # (Lp, Hp)
    h0_prev = h_ref[0:1, :]                      # (1, Hp) == hidden[0][0] in torch

    # scores = enc @ h0 emitted directly as (1, Lp): contract H with H, no transpose.
    scores = jax.lax.dot_general(
        h0_prev, enc, (((1,), (1,)), ((), ())),
        preferred_element_type=jnp.float32)      # (1, Lp)
    lane = jax.lax.broadcasted_iota(jnp.int32, scores.shape, 1)
    scores = jnp.where(lane < seq_len, scores, -1e30)        # mask padded L positions
    m = jnp.max(scores, axis=1, keepdims=True)
    e = jnp.exp(scores - m)
    # Exact reciprocal: attn is a returned output, keep sum(attn) == 1.
    attn = e * pl.reciprocal(jnp.sum(e, axis=1, keepdims=True))
    attn_ref[...] = attn                         # single lane-dense (1, Lp) store

    # attention_applied: replaces the previous hidden state of BOTH LSTM layers.
    ctx = jnp.dot(attn, enc, preferred_element_type=jnp.float32)      # (1, Hp)
    ctx_k = ctx[:, :hk].astype(jnp.bfloat16)                          # (1, Hk)

    # TODO(synk): nn.Dropout(0.2) on `embedded` is identity in eval mode;
    # training-mode stochastic dropout (pltpu.prng_*) intentionally omitted.
    x0 = emb_ref[0]                                                   # (1, Hk) bf16

    def lstm_cell(x_k, c_prev, w_ref, b_ref):
        # Fused input/hidden matmul: [x, ctx] @ [[W_ih]; [W_hh]] with only Hk real
        # rows per path (no padded-zero rows DMA'd).  Gate order i,f,g,o; each gate
        # keeps its own Hp-wide, lane-aligned output slot.
        xh = jnp.concatenate([x_k, ctx_k], axis=1)                    # (1, 2Hk) bf16
        gates = (jnp.dot(xh, w_ref[...], preferred_element_type=jnp.float32)
                 + b_ref[...])                                        # (1, 4Hp) f32
        i = jax.nn.sigmoid(gates[:, 0 * hp:1 * hp])
        f = jax.nn.sigmoid(gates[:, 1 * hp:2 * hp])
        g = jnp.tanh(gates[:, 2 * hp:3 * hp])
        o = jax.nn.sigmoid(gates[:, 3 * hp:4 * hp])
        c_new = f * c_prev + i * g
        h_new = o * jnp.tanh(c_new)
        return h_new, c_new

    h0_new, c0_new = lstm_cell(x0, c_ref[0:1, :], w0_ref, b0_ref)
    h1_new, c1_new = lstm_cell(h0_new[:, :hk].astype(jnp.bfloat16),
                               c_ref[1:2, :], w1_ref, b1_ref)

    # One unmasked (4, Hp) store instead of four 1-row stores.
    hc_ref[...] = jnp.concatenate([h0_new, h1_new, c0_new, c1_new], axis=0)
    # h1 cast to bf16 exactly once; the projection kernel consumes it directly.
    h1b_ref[...] = h1_new[:, :hk].astype(jnp.bfloat16)


def _proj_kernel(h1_ref, wout_ref, bout_ref, logits_ref):
    # Output projection for one V tile (grid axis is "parallel" -> both v7x cores).
    logits_ref[...] = (jnp.dot(h1_ref[...], wout_ref[...],
                               preferred_element_type=jnp.float32)
                       + bout_ref[...])


def attention_decoder_lstm(token_id, hidden, encoder_outputs, params):
    """Mirrors AttentionDecoderLSTM.forward (eval mode).

    token_id        : int32 scalar
    hidden          : (h, c) each (2, 1, H)
    encoder_outputs : (L, H)
    Returns (logits (1, V), (h_new (2,1,H), c_new (2,1,H)), attn_weights (1, L)).
    """
    H = params["hidden_size"]
    V = params["output_size"]
    Hp, Hk, Vp, TV = params["Hp"], params["Hk"], params["Vp"], params["TV"]
    L = encoder_outputs.shape[0]
    Lp = _round_up(L, 128)

    # Lane-pad activations (weights are pre-padded once in init_params).
    enc_p = jnp.zeros((Lp, Hp), jnp.float32).at[:L, :H].set(
        encoder_outputs.astype(jnp.float32))
    h_in = jnp.zeros((2, Hp), jnp.float32).at[:, :H].set(
        hidden[0].reshape(2, H).astype(jnp.float32))
    c_in = jnp.zeros((2, Hp), jnp.float32).at[:, :H].set(
        hidden[1].reshape(2, H).astype(jnp.float32))
    # Clamp the token id so the gather index is always in range.
    tok = jnp.clip(jnp.asarray(token_id, jnp.int32), 0, V - 1).reshape(1)

    # ---------------- Kernel 1: embedding gather + attention + 2-layer LSTM ------
    kernel1 = functools.partial(_attn_lstm_kernel, hk=Hk, hp=Hp, seq_len=L)
    grid_spec1 = pltpu.PrefetchScalarGridSpec(
        num_scalar_prefetch=1,
        grid=(1,),
        in_specs=[
            # Embedding row gathered by the pipeline itself (data-dependent block
            # index on the leading dim; last two block dims == full array dims).
            pl.BlockSpec((1, 1, Hk), lambda i, tok: (tok[0], 0, 0)),
            pl.BlockSpec((2, Hp), lambda i, tok: (0, 0)),            # h
            pl.BlockSpec((2, Hp), lambda i, tok: (0, 0)),            # c
            pl.BlockSpec((Lp, Hp), lambda i, tok: (0, 0)),           # encoder outputs
            pl.BlockSpec((2 * Hk, 4 * Hp), lambda i, tok: (0, 0)),   # fused W layer 0
            pl.BlockSpec((1, 4 * Hp), lambda i, tok: (0, 0)),        # bias layer 0
            pl.BlockSpec((2 * Hk, 4 * Hp), lambda i, tok: (0, 0)),   # fused W layer 1
            pl.BlockSpec((1, 4 * Hp), lambda i, tok: (0, 0)),        # bias layer 1
        ],
        out_specs=[
            pl.BlockSpec((4, Hp), lambda i, tok: (0, 0)),            # [h0;h1;c0;c1]
            pl.BlockSpec((1, Lp), lambda i, tok: (0, 0)),            # attention weights
            pl.BlockSpec((1, Hk), lambda i, tok: (0, 0)),            # h1 (bf16)
        ],
    )
    hc, attn_p, h1_bf16 = pl.pallas_call(
        kernel1,
        grid_spec=grid_spec1,
        out_shape=(
            jax.ShapeDtypeStruct((4, Hp), jnp.float32),
            jax.ShapeDtypeStruct((1, Lp), jnp.float32),
            jax.ShapeDtypeStruct((1, Hk), jnp.bfloat16),
        ),
        compiler_params=pltpu.CompilerParams(
            dimension_semantics=("arbitrary",),
            vmem_limit_bytes=8 * 1024 * 1024,      # working set < 1 MiB
        ),
    )(tok, params["embedding_p"], h_in, c_in, enc_p,
      params["W0"], params["b0"], params["W1"], params["b1"])

    # ---------------- Kernel 2: output projection, V-tiled, parallel -------------
    num_v_tiles = Vp // TV
    logits_p = pl.pallas_call(
        _proj_kernel,
        grid=(num_v_tiles,),
        in_specs=[
            pl.BlockSpec((1, Hk), lambda j: (0, 0)),                 # h1 (bf16)
            pl.BlockSpec((Hk, TV), lambda j: (0, j)),                # w_out column tile
            pl.BlockSpec((1, TV), lambda j: (0, j)),                 # b_out tile
        ],
        out_specs=pl.BlockSpec((1, TV), lambda j: (0, j)),           # logits tile
        out_shape=jax.ShapeDtypeStruct((1, Vp), jnp.float32),
        compiler_params=pltpu.CompilerParams(
            dimension_semantics=("parallel",),     # safe: no cross-tile state
            vmem_limit_bytes=8 * 1024 * 1024,
        ),
    )(h1_bf16, params["w_out_p"], params["b_out_p"])

    logits = logits_p[:, :V]
    h_new = hc[0:2, :H].reshape(2, 1, H)
    c_new = hc[2:4, :H].reshape(2, 1, H)
    attn = attn_p[:, :L]
    return logits, (h_new, c_new), attn


def init_params(key, hidden_size, output_size):
    H, V = hidden_size, output_size
    Hp = _round_up(H, 128)       # lane-aligned gate-slot width / activation width
    Hk = _round_up(H, 16)        # real contraction rows kept for bf16 weights
    Vp = _round_up(V, 512)       # vocab padded to >= 512-wide tiles
    TV = 512
    for t in (2048, 1024):
        if Vp % t == 0:
            TV = t
            break

    ks = jax.random.split(key, 12)
    bound = 1.0 / jnp.sqrt(H)

    def u(k, shape):
        return jax.random.uniform(k, shape, jnp.float32, -bound, bound)

    def bf16_round(x):           # weights live in bf16; reference uses same values
        return x.astype(jnp.bfloat16).astype(jnp.float32)

    embedding = bf16_round(jax.random.normal(ks[0], (V, H), jnp.float32))
    w_ih_l0 = bf16_round(u(ks[1], (H, 4 * H)))
    w_hh_l0 = bf16_round(u(ks[2], (H, 4 * H)))
    b_l0 = u(ks[3], (1, 4 * H)) + u(ks[4], (1, 4 * H))
    w_ih_l1 = bf16_round(u(ks[5], (H, 4 * H)))
    w_hh_l1 = bf16_round(u(ks[6], (H, 4 * H)))
    b_l1 = u(ks[7], (1, 4 * H)) + u(ks[8], (1, 4 * H))
    w_out = bf16_round(u(ks[9], (H, V)))
    b_out = u(ks[10], (1, V))

    def fuse_pad_w(w_ih, w_hh):
        # (2Hk, 4Hp): rows [0:H] -> x path, rows [Hk:Hk+H] -> ctx path; gate g
        # (PyTorch order i,f,g,o) occupies its own Hp-wide lane-aligned slot.
        # Only Hk real rows per path -> no padded-zero weight rows are streamed.
        W = jnp.zeros((2 * Hk, 4 * Hp), jnp.float32)
        for g in range(4):
            W = W.at[0:H, g * Hp:g * Hp + H].set(w_ih[:, g * H:(g + 1) * H])
            W = W.at[Hk:Hk + H, g * Hp:g * Hp + H].set(w_hh[:, g * H:(g + 1) * H])
        return W.astype(jnp.bfloat16)

    def pad_bias(b):
        bp = jnp.zeros((1, 4 * Hp), jnp.float32)
        for g in range(4):
            bp = bp.at[:, g * Hp:g * Hp + H].set(b[:, g * H:(g + 1) * H])
        return bp

    return {
        "hidden_size": H, "output_size": V,
        "Hp": Hp, "Hk": Hk, "Vp": Vp, "TV": TV,
        # f32 copies (bf16-representable values) for the pure-JAX reference:
        "embedding": embedding,
        "w_ih_l0_T": w_ih_l0, "w_hh_l0_T": w_hh_l0, "b_l0": b_l0,
        "w_ih_l1_T": w_ih_l1, "w_hh_l1_T": w_hh_l1, "b_l1": b_l1,
        "w_out_T": w_out, "b_out": b_out,
        # kernel-side padded / fused / bf16 weights:
        "embedding_p": jnp.zeros((V, 1, Hk), jnp.bfloat16)
                          .at[:, 0, :H].set(embedding.astype(jnp.bfloat16)),
        "W0": fuse_pad_w(w_ih_l0, w_hh_l0),
        "b0": pad_bias(b_l0),
        "W1": fuse_pad_w(w_ih_l1, w_hh_l1),
        "b1": pad_bias(b_l1),
        "w_out_p": jnp.zeros((Hk, Vp), jnp.float32)
                      .at[:H, :V].set(w_out).astype(jnp.bfloat16),
        "b_out_p": jnp.zeros((1, Vp), jnp.float32).at[:, :V].set(b_out),
    }


def _reference(token_id, hidden, enc, params):
    """Pure-JAX mirror of the PyTorch forward (eval mode) for verification."""
    H = params["hidden_size"]
    emb = jnp.take(params["embedding"], token_id, axis=0).reshape(1, H)
    h = hidden[0].reshape(2, H)
    c = hidden[1].reshape(2, H)
    scores = enc @ h[0]                               # (L,)
    attn = jax.nn.softmax(scores)
    ctx = (attn @ enc).reshape(1, H)

    def cell(x, h_prev, c_prev, wih, whh, b):
        g = x @ wih + h_prev @ whh + b
        i, f, gg, o = jnp.split(g, 4, axis=1)
        cn = jax.nn.sigmoid(f) * c_prev + jax.nn.sigmoid(i) * jnp.tanh(gg)
        hn = jax.nn.sigmoid(o) * jnp.tanh(cn)
        return hn, cn

    h0, c0 = cell(emb, ctx, c[0:1], params["w_ih_l0_T"], params["w_hh_l0_T"], params["b_l0"])
    h1, c1 = cell(h0, ctx, c[1:2], params["w_ih_l1_T"], params["w_hh_l1_T"], params["b_l1"])
    logits = h1 @ params["w_out_T"] + params["b_out"]
    return logits, (jnp.stack([h0[0], h1[0]])[:, None, :],
                    jnp.stack([c0[0], c1[0]])[:, None, :]), attn.reshape(1, -1)


if __name__ == "__main__":
    H, V, L = 32, 300, 10     # hidden, vocab (output_size), encoder length
    key = jax.random.PRNGKey(0)
    k_params, k_h, k_c, k_enc = jax.random.split(key, 4)

    params = init_params(k_params, H, V)
    token_id = jnp.int32(5)
    hidden = (jax.random.normal(k_h, (2, 1, H), jnp.float32),
              jax.random.normal(k_c, (2, 1, H), jnp.float32))
    encoder_outputs = jax.random.normal(k_enc, (L, H), jnp.float32)

    logits, (h_new, c_new), attn = attention_decoder_lstm(
        token_id, hidden, encoder_outputs, params)
    jax.block_until_ready((logits, h_new, c_new, attn))

    ref_logits, (ref_h, ref_c), ref_attn = _reference(
        token_id, hidden, encoder_outputs, params)

    assert logits.shape == (1, V) and attn.shape == (1, L)
    assert h_new.shape == (2, 1, H) and c_new.shape == (2, 1, H)
    # bf16 weight/activation path -> relaxed tolerance.
    assert jnp.allclose(logits, ref_logits, rtol=2e-2, atol=2e-2)
    assert jnp.allclose(h_new, ref_h, rtol=2e-2, atol=2e-2)
    assert jnp.allclose(c_new, ref_c, rtol=2e-2, atol=2e-2)
    assert jnp.allclose(attn, ref_attn, rtol=2e-2, atol=2e-2)

    print("KERNEL_OK")
</pallas_src>

<mosaic_0001>
module attributes {stable_mosaic.version = 11 : i64} {
  func.func @_attn_lstm_kernel(%arg0: i32, %arg1: memref<1xi32, #tpu.memory_space<smem>>, %arg2: memref<1x1x32xbf16, #tpu.memory_space<vmem>>, %arg3: memref<2x128xf32, #tpu.memory_space<vmem>>, %arg4: memref<2x128xf32, #tpu.memory_space<vmem>>, %arg5: memref<128x128xf32, #tpu.memory_space<vmem>>, %arg6: memref<64x512xbf16, #tpu.memory_space<vmem>>, %arg7: memref<1x512xf32, #tpu.memory_space<vmem>>, %arg8: memref<64x512xbf16, #tpu.memory_space<vmem>>, %arg9: memref<1x512xf32, #tpu.memory_space<vmem>>, %arg10: memref<4x128xf32, #tpu.memory_space<vmem>>, %arg11: memref<1x128xf32, #tpu.memory_space<vmem>>, %arg12: memref<1x32xbf16, #tpu.memory_space<vmem>>) attributes {dimension_semantics = [#tpu.dimension_semantics<arbitrary>], iteration_bounds = array<i64: 1>, scalar_prefetch = 1 : i64, scratch_operands = 0 : i64, tpu.core_type = #tpu.core_type<tc>, window_params = [{transform_indices = @transform_0, window_bounds = array<i64: 1, 1, 32>}, {pipeline_mode = #tpu.pipeline_mode<synchronous>, transform_indices = @transform_1, window_bounds = array<i64: 2, 128>}, {pipeline_mode = #tpu.pipeline_mode<synchronous>, transform_indices = @transform_2, window_bounds = array<i64: 2, 128>}, {pipeline_mode = #tpu.pipeline_mode<synchronous>, transform_indices = @transform_3, window_bounds = array<i64: 128, 128>}, {pipeline_mode = #tpu.pipeline_mode<synchronous>, transform_indices = @transform_4, window_bounds = array<i64: 64, 512>}, {pipeline_mode = #tpu.pipeline_mode<synchronous>, transform_indices = @transform_5, window_bounds = array<i64: 1, 512>}, {pipeline_mode = #tpu.pipeline_mode<synchronous>, transform_indices = @transform_6, window_bounds = array<i64: 64, 512>}, {pipeline_mode = #tpu.pipeline_mode<synchronous>, transform_indices = @transform_7, window_bounds = array<i64: 1, 512>}, {pipeline_mode = #tpu.pipeline_mode<synchronous>, transform_indices = @transform_8, window_bounds = array<i64: 4, 128>}, {pipeline_mode = #tpu.pipeline_mode<synchronous>, transform_indices = @transform_9, window_bounds = array<i64: 1, 128>}, {pipeline_mode = #tpu.pipeline_mode<synchronous>, transform_indices = @transform_10, window_bounds = array<i64: 1, 32>}]} {
    %c0 = arith.constant 0 : index
    %c0_0 = arith.constant 0 : index
    %0 = vector.load %arg5[%c0, %c0_0] : memref<128x128xf32, #tpu.memory_space<vmem>>, vector<128x128xf32>
    %c0_1 = arith.constant 0 : index
    %c0_2 = arith.constant 0 : index
    %1 = vector.load %arg3[%c0_1, %c0_2] : memref<2x128xf32, #tpu.memory_space<vmem>>, vector<1x128xf32>
    %cst = arith.constant dense<0.000000e+00> : vector<1x128xf32>
    %2 = tpu.matmul %1, %0, %cst {dimension_numbers = #tpu.dot_dimension_numbers<[1], [1], [0], [0], [0, 0, 1, 0], [], []>} : vector<1x128xf32>, vector<128x128xf32>, vector<1x128xf32> -> vector<1x128xf32>
    %3 = tpu.iota {dimensions = array<i32: 1>} : vector<1x128xi32>
    %c10_i32 = arith.constant 10 : i32
    %4 = vector.broadcast %c10_i32 : i32 to vector<1x128xi32>
    %5 = arith.cmpi slt, %3, %4 : vector<1x128xi32>
    %cst_3 = arith.constant -1.000000e+30 : f32
    %6 = vector.broadcast %cst_3 : f32 to vector<1x128xf32>
    %7 = arith.select %5, %2, %6 : vector<1x128xi1>, vector<1x128xf32>
    %cst_4 = arith.constant dense<0xFF800000> : vector<1xf32>
    %8 = vector.multi_reduction <maximumf>, %7, %cst_4 [1] : vector<1x128xf32> to vector<1xf32>
    %9 = vector.shape_cast %8 : vector<1xf32> to vector<1x1xf32>
    %10 = vector.broadcast %9 : vector<1x1xf32> to vector<1x128xf32>
    %11 = arith.subf %7, %10 : vector<1x128xf32>
    %12 = math.exp %11 : vector<1x128xf32>
    %cst_5 = arith.constant dense<0.000000e+00> : vector<1xf32>
    %13 = vector.multi_reduction <add>, %12, %cst_5 [1] : vector<1x128xf32> to vector<1xf32>
    %14 = vector.shape_cast %13 : vector<1xf32> to vector<1x1xf32>
    %15 = tpu.reciprocal %14 : vector<1x1xf32> -> vector<1x1xf32>
    %16 = vector.broadcast %15 : vector<1x1xf32> to vector<1x128xf32>
    %17 = arith.mulf %12, %16 : vector<1x128xf32>
    %c0_6 = arith.constant 0 : index
    %c0_7 = arith.constant 0 : index
    %18 = vector.load %arg11[%c0_6, %c0_7] : memref<1x128xf32, #tpu.memory_space<vmem>>, vector<1x128xf32>
    tpu.vector_store %arg11[%c0_6, %c0_7], %17 {strides = array<i32>} : memref<1x128xf32, #tpu.memory_space<vmem>>, vector<1x128xf32>,
    %cst_8 = arith.constant dense<0.000000e+00> : vector<1x128xf32>
    %19 = tpu.matmul %17, %0, %cst_8 {dimension_numbers = #tpu.dot_dimension_numbers<[1], [0], [0], [1], [0, 0, 1, 1], [], []>} : vector<1x128xf32>, vector<128x128xf32>, vector<1x128xf32> -> vector<1x128xf32>
    %20 = vector.extract_strided_slice %19 {offsets = [0, 0], sizes = [1, 32], strides = [1, 1]} : vector<1x128xf32> to vector<1x32xf32>
    %21 = arith.truncf %20 : vector<1x32xf32> to vector<1x32xbf16>
    %c0_9 = arith.constant 0 : index
    %c0_10 = arith.constant 0 : index
    %c0_11 = arith.constant 0 : index
    %22 = vector.load %arg2[%c0_9, %c0_10, %c0_11] : memref<1x1x32xbf16, #tpu.memory_space<vmem>>, vector<1x1x32xbf16>
    %23 = vector.shape_cast %22 : vector<1x1x32xbf16> to vector<1x32xbf16>
    %c0_12 = arith.constant 0 : index
    %c0_13 = arith.constant 0 : index
    %24 = vector.load %arg4[%c0_12, %c0_13] : memref<2x128xf32, #tpu.memory_space<vmem>>, vector<1x128xf32>
    %25 = tpu.concatenate %23, %21 in 1 : vector<1x32xbf16>, vector<1x32xbf16> -> vector<1x64xbf16>
    %c0_14 = arith.constant 0 : index
    %c0_15 = arith.constant 0 : index
    %26 = vector.load %arg6[%c0_14, %c0_15] : memref<64x512xbf16, #tpu.memory_space<vmem>>, vector<64x512xbf16>
    %cst_16 = arith.constant dense<0.000000e+00> : vector<1x512xf32>
    %27 = tpu.matmul %25, %26, %cst_16 {dimension_numbers = #tpu.dot_dimension_numbers<[1], [0], [0], [1], [0, 0, 1, 1], [], []>} : vector<1x64xbf16>, vector<64x512xbf16>, vector<1x512xf32> -> vector<1x512xf32>
    %c0_17 = arith.constant 0 : index
    %c0_18 = arith.constant 0 : index
    %28 = vector.load %arg7[%c0_17, %c0_18] : memref<1x512xf32, #tpu.memory_space<vmem>>, vector<1x512xf32>
    %29 = arith.addf %27, %28 : vector<1x512xf32>
    %30 = vector.extract_strided_slice %29 {offsets = [0, 0], sizes = [1, 128], strides = [1, 1]} : vector<1x512xf32> to vector<1x128xf32>
    %31 = arith.negf %30 : vector<1x128xf32>
    %32 = math.exp %31 : vector<1x128xf32>
    %cst_19 = arith.constant 1.000000e+00 : f32
    %33 = vector.broadcast %cst_19 : f32 to vector<1x128xf32>
    %34 = arith.addf %33, %32 : vector<1x128xf32>
    %35 = arith.divf %33, %34 : vector<1x128xf32>
    %36 = vector.extract_strided_slice %29 {offsets = [0, 128], sizes = [1, 128], strides = [1, 1]} : vector<1x512xf32> to vector<1x128xf32>
    %37 = arith.negf %36 : vector<1x128xf32>
    %38 = math.exp %37 : vector<1x128xf32>
    %cst_20 = arith.constant 1.000000e+00 : f32
    %39 = vector.broadcast %cst_20 : f32 to vector<1x128xf32>
    %40 = arith.addf %39, %38 : vector<1x128xf32>
    %41 = arith.divf %39, %40 : vector<1x128xf32>
    %42 = vector.extract_strided_slice %29 {offsets = [0, 256], sizes = [1, 128], strides = [1, 1]} : vector<1x512xf32> to vector<1x128xf32>
    %43 = math.tanh %42 : vector<1x128xf32>
    %44 = vector.extract_strided_slice %29 {offsets = [0, 384], sizes = [1, 128], strides = [1, 1]} : vector<1x512xf32> to vector<1x128xf32>
    %45 = arith.negf %44 : vector<1x128xf32>
    %46 = math.exp %45 : vector<1x128xf32>
    %cst_21 = arith.constant 1.000000e+00 : f32
    %47 = vector.broadcast %cst_21 : f32 to vector<1x128xf32>
    %48 = arith.addf %47, %46 : vector<1x128xf32>
    %49 = arith.divf %47, %48 : vector<1x128xf32>
    %50 = arith.mulf %41, %24 : vector<1x128xf32>
    %51 = arith.mulf %35, %43 : vector<1x128xf32>
    %52 = arith.addf %50, %51 : vector<1x128xf32>
    %53 = math.tanh %52 : vector<1x128xf32>
    %54 = arith.mulf %49, %53 : vector<1x128xf32>
    %55 = vector.extract_strided_slice %54 {offsets = [0, 0], sizes = [1, 32], strides = [1, 1]} : vector<1x128xf32> to vector<1x32xf32>
    %56 = arith.truncf %55 : vector<1x32xf32> to vector<1x32xbf16>
    %c1 = arith.constant 1 : index
    %c0_22 = arith.constant 0 : index
    %57 = vector.load %arg4[%c1, %c0_22] : memref<2x128xf32, #tpu.memory_space<vmem>>, vector<1x128xf32>
    %58 = tpu.concatenate %56, %21 in 1 : vector<1x32xbf16>, vector<1x32xbf16> -> vector<1x64xbf16>
    %c0_23 = arith.constant 0 : index
    %c0_24 = arith.constant 0 : index
    %59 = vector.load %arg8[%c0_23, %c0_24] : memref<64x512xbf16, #tpu.memory_space<vmem>>, vector<64x512xbf16>
    %cst_25 = arith.constant dense<0.000000e+00> : vector<1x512xf32>
    %60 = tpu.matmul %58, %59, %cst_25 {dimension_numbers = #tpu.dot_dimension_numbers<[1], [0], [0], [1], [0, 0, 1, 1], [], []>} : vector<1x64xbf16>, vector<64x512xbf16>, vector<1x512xf32> -> vector<1x512xf32>
    %c0_26 = arith.constant 0 : index
    %c0_27 = arith.constant 0 : index
    %61 = vector.load %arg9[%c0_26, %c0_27] : memref<1x512xf32, #tpu.memory_space<vmem>>, vector<1x512xf32>
    %62 = arith.addf %60, %61 : vector<1x512xf32>
    %63 = vector.extract_strided_slice %62 {offsets = [0, 0], sizes = [1, 128], strides = [1, 1]} : vector<1x512xf32> to vector<1x128xf32>
    %64 = arith.negf %63 : vector<1x128xf32>
    %65 = math.exp %64 : vector<1x128xf32>
    %cst_28 = arith.constant 1.000000e+00 : f32
    %66 = vector.broadcast %cst_28 : f32 to vector<1x128xf32>
    %67 = arith.addf %66, %65 : vector<1x128xf32>
    %68 = arith.divf %66, %67 : vector<1x128xf32>
    %69 = vector.extract_strided_slice %62 {offsets = [0, 128], sizes = [1, 128], strides = [1, 1]} : vector<1x512xf32> to vector<1x128xf32>
    %70 = arith.negf %69 : vector<1x128xf32>
    %71 = math.exp %70 : vector<1x128xf32>
    %cst_29 = arith.constant 1.000000e+00 : f32
    %72 = vector.broadcast %cst_29 : f32 to vector<1x128xf32>
    %73 = arith.addf %72, %71 : vector<1x128xf32>
    %74 = arith.divf %72, %73 : vector<1x128xf32>
    %75 = vector.extract_strided_slice %62 {offsets = [0, 256], sizes = [1, 128], strides = [1, 1]} : vector<1x512xf32> to vector<1x128xf32>
    %76 = math.tanh %75 : vector<1x128xf32>
    %77 = vector.extract_strided_slice %62 {offsets = [0, 384], sizes = [1, 128], strides = [1, 1]} : vector<1x512xf32> to vector<1x128xf32>
    %78 = arith.negf %77 : vector<1x128xf32>
    %79 = math.exp %78 : vector<1x128xf32>
    %cst_30 = arith.constant 1.000000e+00 : f32
    %80 = vector.broadcast %cst_30 : f32 to vector<1x128xf32>
    %81 = arith.addf %80, %79 : vector<1x128xf32>
    %82 = arith.divf %80, %81 : vector<1x128xf32>
    %83 = arith.mulf %74, %57 : vector<1x128xf32>
    %84 = arith.mulf %68, %76 : vector<1x128xf32>
    %85 = arith.addf %83, %84 : vector<1x128xf32>
    %86 = math.tanh %85 : vector<1x128xf32>
    %87 = arith.mulf %82, %86 : vector<1x128xf32>
    %88 = tpu.concatenate %54, %87, %52, %85 in 0 : vector<1x128xf32>, vector<1x128xf32>, vector<1x128xf32>, vector<1x128xf32> -> vector<4x128xf32>
    %c0_31 = arith.constant 0 : index
    %c0_32 = arith.constant 0 : index
    %89 = vector.load %arg10[%c0_31, %c0_32] : memref<4x128xf32, #tpu.memory_space<vmem>>, vector<4x128xf32>
    tpu.vector_store %arg10[%c0_31, %c0_32], %88 {strides = array<i32>} : memref<4x128xf32, #tpu.memory_space<vmem>>, vector<4x128xf32>,
    %90 = vector.extract_strided_slice %87 {offsets = [0, 0], sizes = [1, 32], strides = [1, 1]} : vector<1x128xf32> to vector<1x32xf32>
    %91 = arith.truncf %90 : vector<1x32xf32> to vector<1x32xbf16>
    %c0_33 = arith.constant 0 : index
    %c0_34 = arith.constant 0 : index
    %92 = vector.load %arg12[%c0_33, %c0_34] : memref<1x32xbf16, #tpu.memory_space<vmem>>, vector<1x32xbf16>
    tpu.vector_store %arg12[%c0_33, %c0_34], %91 {strides = array<i32>} : memref<1x32xbf16, #tpu.memory_space<vmem>>, vector<1x32xbf16>,
    return
  }
  func.func @transform_0(%arg0: i32, %arg1: memref<1xi32, #tpu.memory_space<smem>>) -> (i32, i32, i32) {
    %c0 = arith.constant 0 : index
    %0 = memref.load %arg1[%c0] : memref<1xi32, #tpu.memory_space<smem>>
    %c0_i32 = arith.constant 0 : i32
    %c0_i32_0 = arith.constant 0 : i32
    %c0_i32_1 = arith.constant 0 : i32
    return %0, %c0_i32, %c0_i32_0 : i32, i32, i32
  }
  func.func @transform_1(%arg0: i32, %arg1: memref<1xi32, #tpu.memory_space<smem>>) -> (i32, i32) {
    %c0_i32 = arith.constant 0 : i32
    %c0_i32_0 = arith.constant 0 : i32
    %c0_i32_1 = arith.constant 0 : i32
    return %c0_i32, %c0_i32_0 : i32, i32
  }
  func.func @transform_2(%arg0: i32, %arg1: memref<1xi32, #tpu.memory_space<smem>>) -> (i32, i32) {
    %c0_i32 = arith.constant 0 : i32
    %c0_i32_0 = arith.constant 0 : i32
    %c0_i32_1 = arith.constant 0 : i32
    return %c0_i32, %c0_i32_0 : i32, i32
  }
  func.func @transform_3(%arg0: i32, %arg1: memref<1xi32, #tpu.memory_space<smem>>) -> (i32, i32) {
    %c0_i32 = arith.constant 0 : i32
    %c0_i32_0 = arith.constant 0 : i32
    %c0_i32_1 = arith.constant 0 : i32
    return %c0_i32, %c0_i32_0 : i32, i32
  }
  func.func @transform_4(%arg0: i32, %arg1: memref<1xi32, #tpu.memory_space<smem>>) -> (i32, i32) {
    %c0_i32 = arith.constant 0 : i32
    %c0_i32_0 = arith.constant 0 : i32
    %c0_i32_1 = arith.constant 0 : i32
    return %c0_i32, %c0_i32_0 : i32, i32
  }
  func.func @transform_5(%arg0: i32, %arg1: memref<1xi32, #tpu.memory_space<smem>>) -> (i32, i32) {
    %c0_i32 = arith.constant 0 : i32
    %c0_i32_0 = arith.constant 0 : i32
    %c0_i32_1 = arith.constant 0 : i32
    return %c0_i32, %c0_i32_0 : i32, i32
  }
  func.func @transform_6(%arg0: i32, %arg1: memref<1xi32, #tpu.memory_space<smem>>) -> (i32, i32) {
    %c0_i32 = arith.constant 0 : i32
    %c0_i32_0 = arith.constant 0 : i32
    %c0_i32_1 = arith.constant 0 : i32
    return %c0_i32, %c0_i32_0 : i32, i32
  }
  func.func @transform_7(%arg0: i32, %arg1: memref<1xi32, #tpu.memory_space<smem>>) -> (i32, i32) {
    %c0_i32 = arith.constant 0 : i32
    %c0_i32_0 = arith.constant 0 : i32
    %c0_i32_1 = arith.constant 0 : i32
    return %c0_i32, %c0_i32_0 : i32, i32
  }
  func.func @transform_8(%arg0: i32, %arg1: memref<1xi32, #tpu.memory_space<smem>>) -> (i32, i32) {
    %c0_i32 = arith.constant 0 : i32
    %c0_i32_0 = arith.constant 0 : i32
    %c0_i32_1 = arith.constant 0 : i32
    return %c0_i32, %c0_i32_0 : i32, i32
  }
  func.func @transform_9(%arg0: i32, %arg1: memref<1xi32, #tpu.memory_space<smem>>) -> (i32, i32) {
    %c0_i32 = arith.constant 0 : i32
    %c0_i32_0 = arith.constant 0 : i32
    %c0_i32_1 = arith.constant 0 : i32
    return %c0_i32, %c0_i32_0 : i32, i32
  }
  func.func @transform_10(%arg0: i32, %arg1: memref<1xi32, #tpu.memory_space<smem>>) -> (i32, i32) {
    %c0_i32 = arith.constant 0 : i32
    %c0_i32_0 = arith.constant 0 : i32
    %c0_i32_1 = arith.constant 0 : i32
    return %c0_i32, %c0_i32_0 : i32, i32
  }
}

</mosaic_0001>

<bundles_post_ra>
// kernel: tpu_custom_call.1
= control target key start
LH: loop header
LB: loop body
LE: loop exit
PB: predicated region body
PF: predicated region fallthrough
CT: control target
= control target key end

     0   :  { %18 = vsyncpa [#allocation5], 0  ;;  %s1448_s0 = inlined_call_operand.<no memory space> [shape: s32[1], index: 0, kind: input, shape index: {}]   ;;  %s1449_s1 = inlined_call_operand.vmem [shape: bf16[300,1,32], index: 1, kind: input, shape index: {}]   ;;  %s1450_s2 = inlined_call_operand.vmem [shape: f32[2,128], index: 2, kind: input, shape index: {}]   ;;  %s1451_s3 = inlined_call_operand.vmem [shape: f32[2,128], index: 3, kind: input, shape index: {}]   ;;  %s1452_s4 = inlined_call_operand.vmem [shape: f32[128,128], index: 4, kind: input, shape index: {}]   ;;  %s1453_s5 = inlined_call_operand.vmem [shape: bf16[64,512], index: 5, kind: input, shape index: {}]   ;;  %s1454_s6 = inlined_call_operand.vmem [shape: f32[1,512], index: 6, kind: input, shape index: {}]   ;;  %s1455_s7 = inlined_call_operand.hbm [shape: bf16[64,512], index: 7, kind: input, shape index: {}]   ;;  %s1456_s8 = inlined_call_operand.vmem [shape: f32[1,512], index: 8, kind: input, shape index: {}]   ;;  %s1457_s9 = inlined_call_operand.hbm [shape: f32[4,128], index: 9, kind: output, shape index: {0}]   ;;  %s1458_s10 = inlined_call_operand.hbm [shape: f32[1,128], index: 10, kind: output, shape index: {1}]   ;;  %s1459_s11 = inlined_call_operand.hbm [shape: bf16[1,32], index: 11, kind: output, shape index: {2}]  }
   0x1   :  { %19 = vsyncpa [#allocation6], 0 }
   0x2   :  { %20 = vsyncpa [#allocation9], 0  ;;  %s1156_s17 = smov [#allocation4]   ;;  %s1062_s21 = scalar_lea.hbm %s1455_s7, 2048 }
   0x3   :  { %s43_s18 = sshll.u32 %s1156_s17, 4  ;;  %p1063_p0 = scmp.ne.s32.totalorder %s1455_s7, %s1062_s21  ;;  %s44_s18 = int_to_ptr.vmem [resolvable:$true] %s43_s18 }
   0x4   :  { %p1066_p1 = scmp.lt.u32.totalorder %s1062_s21, %s1455_s7 }
   0x6   :  { %p1068_p2 = pnand %p1066_p1, %p1063_p0 }
   0x8   :  { %1071 = shalt.err (!%p1068_p2)
}
   0x9   :  { %s1072_s26 = scalar_lea.vmem %s44_s18, 2048  ;;  %p1077_p4 = scmp.lt.s32.totalorder %s44_s18, %s44_s18 }
   0xa   :  { %p1073_p3 = scmp.ne.s32.totalorder %s44_s18, %s1072_s26  ;;  %p1078_p5 = scmp.lt.s32.totalorder %s1072_s26, %s1072_s26 }
   0xc   :  { %p1079_p6 = por %p1078_p5, %p1077_p4 }
   0xe   :  { %p1080_p7 = pnand %p1079_p6, %p1073_p3 }
  0x10   :  { %1083 = shalt.err (!%p1080_p7)
}
  0x11   :  { %s1157_s27 = smov 256   ;;  %s1158_s28 = smov 16  }
  0x12   :  { %49 = dma.hbm_to_vmem [thread:$0]  %s1455_s7, 2048, %s44_s18, [#allocation5], %s1157_s27, %s1157_s27, %s1158_s28  }
  0x13   :  { %1150 = dma.done.wait [#allocation5], 2048  }
  0x14   :  { %1151 = vsyncadd [#allocation5], 4294965248  ;;  %v1159_v0 = vmov 0.0|0.0   ;;  %vm1160_vm0 = vmmov 0   ;;  %v1161_v1 = vmov 0.0   ;;  %v65_v2 = vld [vmem:[%s1452_s4] sm:$0xff]  ;;  %v152_v27 = vlaneseq }
  0x15   :  { %919 = vmatprep.subr.bf16.mxu0 %v1159_v0  ;;  %881 = vmatprep.mubr.msk.f32.mxu0 %vm1160_vm0, %v1161_v1  ;;  %v66_v3 = vld [vmem:[%s1452_s4 + $0x8] sm:$0xff]  ;;  %v67_v5 = vld [vmem:[%s1452_s4 + $0x10] sm:$0xff]  ;;  %v68_v6 = vld [vmem:[%s1452_s4 + $0x18] sm:$0xff]  ;;  %vm156_vm2 = vcmask 1040384   ;;  %v1162_v50 = vmov 0   ;;  %s1163_s21 = smov 32  }
  0x16   :  { %943 = vmatprep.subr.bf16.mxu1 %v1159_v0  ;;  %916 = vmatprep.mubr.msk.f32.mxu1 %vm1160_vm0, %v1161_v1  ;;  %v920_v4 = vpack.c.bf16 %v66_v3, %v65_v2  ;;  %v923_v7 = vpack.c.bf16 %v68_v6, %v67_v5  ;;  %v69_v8 = vld [vmem:[%s1452_s4 + $0x20] sm:$0xff]  ;;  %v70_v9 = vld [vmem:[%s1452_s4 + $0x28] sm:$0xff]  ;;  %v71_v10 = vld [vmem:[%s1452_s4 + $0x30] sm:$0xff]  ;;  %v153_v28 = vand.u32 127, %v152_v27  ;;  %p60_p8 = scmp.lt.s32.totalorder %s1448_s0, 299  ;;  %vm245_vm3 = vcmask 261120  }
  0x17   :  { %v72_v11 = vld [vmem:[%s1452_s4 + $0x38] sm:$0xff]  ;;  %v926_v12 = vpack.c.bf16 %v70_v9, %v69_v8  ;;  %v73_v13 = vld [vmem:[%s1452_s4 + $0x40] sm:$0xff]  ;;  %v74_v14 = vld [vmem:[%s1452_s4 + $0x48] sm:$0xff]  ;;  %vm367_vm4 = vcmask 523264  }
  0x18   :  { %921 = vmatpush3.bf16.xpose.msra.mxu0 %v920_v4  ;;  %945 = vmatpush3.bf16.msra.mxu1 %v920_v4  ;;  %v929_v15 = vpack.c.bf16 %v72_v11, %v71_v10  ;;  %v932_v16 = vpack.c.bf16 %v74_v14, %v73_v13  ;;  %v75_v17 = vld [vmem:[%s1452_s4 + $0x50] sm:$0xff]  ;;  %v76_v18 = vld [vmem:[%s1452_s4 + $0x58] sm:$0xff]  ;;  %v77_v20 = vld [vmem:[%s1452_s4 + $0x60] sm:$0xff]  ;;  %vm154_vm1 = vcmp.lt.s32.totalorder %v153_v28, 10  ;;  %s1461_s0 = smov (!%p60_p8, %s1448_s0), 299 }
  0x19   :  { %922 = vmatprep.subr.bf16.mxu0 %v1159_v0  ;;  %946 = vmatprep.subr.bf16.mxu1 %v1159_v0  ;;  %v935_v19 = vpack.c.bf16 %v76_v18, %v75_v17  ;;  %v78_v21 = vld [vmem:[%s1452_s4 + $0x68] sm:$0xff]  ;;  %v79_v23 = vld [vmem:[%s1452_s4 + $0x70] sm:$0xff]  ;;  %v80_v24 = vld [vmem:[%s1452_s4 + $0x78] sm:$0xff]  ;;  %s62_s26 = scalar_lea.vmem %s1449_s1, %s1461_s0 }
  0x1a   :  { %v938_v22 = vpack.c.bf16 %v78_v21, %v77_v20  ;;  %v941_v25 = vpack.c.bf16 %v80_v24, %v79_v23  ;;  %v81_v26 = vld [vmem:[%s1450_s2] sm:$0x1]  ;;  %v980_v42 = vld [vmem:[%s1453_s5 + $0x4] ss:$16 sps:$4 sm:$0xff]   ;;  %v992_v49 = vld [vmem:[%s1453_s5 + $0xc] ss:$16 sps:$4 sm:$0xff]  }
  0x1b   :  { %v978_v41 = vld [vmem:[%s1453_s5] ss:$16 sps:$4 sm:$0xff]   ;;  %v983_v43 = vld [vmem:[%s1453_s5 + $0x24] ss:$16 sps:$4 sm:$0xff]   ;;  %v990_v55 = vld [vmem:[%s1453_s5 + $0x8] ss:$16 sps:$4 sm:$0xff]  }
  0x1c   :  { %948 = vmatpush3.bf16.msra.mxu1 %v923_v7  ;;  %v981_v44 = vld [vmem:[%s1453_s5 + $0x20] ss:$16 sps:$4 sm:$0xff]   ;;  %v986_v45 = vld [vmem:[%s1453_s5 + $0x44] ss:$16 sps:$4 sm:$0xff]   ;;  %v995_v57 = vld [vmem:[%s1453_s5 + $0x2c] ss:$16 sps:$4 sm:$0xff]  }
  0x1d   :  { %949 = vmatprep.subr.bf16.mxu1 %v1159_v0  ;;  %v984_v46 = vld [vmem:[%s1453_s5 + $0x40] ss:$16 sps:$4 sm:$0xff]   ;;  %v989_v47 = vld [vmem:[%s1453_s5 + $0x64] ss:$16 sps:$4 sm:$0xff]   ;;  %v993_v59 = vld [vmem:[%s1453_s5 + $0x28] ss:$16 sps:$4 sm:$0xff]  }
  0x1e   :  { %v987_v48 = vld [vmem:[%s1453_s5 + $0x60] ss:$16 sps:$4 sm:$0xff]   ;;  %v998_v60 = vld [vmem:[%s1453_s5 + $0x4c] ss:$16 sps:$4 sm:$0xff]   ;;  %v996_v61 = vld [vmem:[%s1453_s5 + $0x48] ss:$16 sps:$4 sm:$0xff]  }
  0x1f   :  { %v240_v54 = vld [vmem:[%s62_s26] sm:$0x1]  ;;  %v1001_v62 = vld [vmem:[%s1453_s5 + $0x6c] ss:$16 sps:$4 sm:$0xff]   ;;  %v999_v63 = vld [vmem:[%s1453_s5 + $0x68] ss:$16 sps:$4 sm:$0xff]  }
  0x20   :  { %924 = vmatpush3.bf16.xpose.msra.mxu0 %v923_v7  ;;  %951 = vmatpush3.bf16.msra.mxu1 %v926_v12  ;;  %v1007_v1 = vld [vmem:[#allocation4 + $0xc] ss:$16 sps:$4 sm:$0xff]   ;;  %v1002_v2 = vld [vmem:[#allocation4] ss:$16 sps:$4 sm:$0xff]   ;;  %v1005_v3 = vld [vmem:[#allocation4 + $0x8] ss:$16 sps:$4 sm:$0xff]  }
  0x21   :  { %925 = vmatprep.subr.bf16.mxu0 %v1159_v0  ;;  %952 = vmatprep.subr.bf16.mxu1 %v1159_v0  ;;  %v1010_v4 = vld [vmem:[#allocation4 + $0x24] ss:$16 sps:$4 sm:$0xff]   ;;  %v1008_v5 = vld [vmem:[#allocation4 + $0x20] ss:$16 sps:$4 sm:$0xff]   ;;  %v1011_v6 = vld [vmem:[#allocation4 + $0x28] ss:$16 sps:$4 sm:$0xff]  }
  0x22   :  { %v1013_v7 = vld [vmem:[#allocation4 + $0x2c] ss:$16 sps:$4 sm:$0xff]   ;;  %v1016_v8 = vld [vmem:[#allocation4 + $0x44] ss:$16 sps:$4 sm:$0xff]   ;;  %v1014_v10 = vld [vmem:[#allocation4 + $0x40] ss:$16 sps:$4 sm:$0xff]  }
  0x23   :  { %v1019_v9 = vld [vmem:[#allocation4 + $0x4c] ss:$16 sps:$4 sm:$0xff]   ;;  %v1017_v11 = vld [vmem:[#allocation4 + $0x48] ss:$16 sps:$4 sm:$0xff]   ;;  %v1020_v14 = vld [vmem:[#allocation4 + $0x60] ss:$16 sps:$4 sm:$0xff]  }
  0x24   :  { %954 = vmatpush3.bf16.msra.mxu1 %v929_v15  ;;  %v1025_v13 = vld [vmem:[#allocation4 + $0x6c] ss:$16 sps:$4 sm:$0xff]   ;;  %v265_v18 = vld [vmem:[%s1454_s6] sm:$0xf] }
  0x25   :  { %955 = vmatprep.subr.bf16.mxu1 %v1159_v0 }
  0x28   :  { %927 = vmatpush3.bf16.xpose.msra.mxu0 %v926_v12  ;;  %957 = vmatpush3.bf16.msra.mxu1 %v932_v16  ;;  %v1022_v12 = vld [vmem:[#allocation4 + $0x64] ss:$16 sps:$4 sm:$0xff]  }
  0x29   :  { %928 = vmatprep.subr.bf16.mxu0 %v1159_v0  ;;  %958 = vmatprep.subr.bf16.mxu1 %v1159_v0 }
  0x2c   :  { %960 = vmatpush3.bf16.msra.mxu1 %v935_v19 }
  0x2d   :  { %961 = vmatprep.subr.bf16.mxu1 %v1159_v0 }
  0x30   :  { %930 = vmatpush3.bf16.xpose.msra.mxu0 %v929_v15  ;;  %963 = vmatpush3.bf16.msra.mxu1 %v938_v22  ;;  %v1023_v15 = vld [vmem:[#allocation4 + $0x68] ss:$16 sps:$4 sm:$0xff]  }
  0x31   :  { %931 = vmatprep.subr.bf16.mxu0 %v1159_v0  ;;  %964 = vmatprep.subr.bf16.mxu1 %v1159_v0 }
  0x34   :  { %966 = vmatpush3.bf16.msra.mxu1 %v941_v25 }
  0x35   :  { %370 = vmatprep.subr.bf16.mxu1 %v980_v42 }
  0x38   :  { %933 = vmatpush3.bf16.xpose.msra.mxu0 %v932_v16  ;;  %v1357_v16 = vshrl.u32 %v152_v27, 7 }
  0x39   :  { %934 = vmatprep.subr.bf16.mxu0 %v1159_v0 }
  0x3a   :  { %v349_v17 = vsub.s32 0, %v1357_v16 }
  0x3c   :  { %v350_v20 = vrot.slane %v265_v18, %v349_v17 }
  0x40   :  { %936 = vmatpush3.bf16.xpose.msra.mxu0 %v935_v19  ;;  %v353_v19 = vsub.s32 1, %v1357_v16 }
  0x41   :  { %937 = vmatprep.subr.bf16.mxu0 %v1159_v0 }
  0x42   :  { %v354_v21 = vrot.slane %v265_v18, %v353_v19 }
  0x48   :  { %939 = vmatpush3.bf16.xpose.msra.mxu0 %v938_v22 }
  0x49   :  { %940 = vmatprep.subr.bf16.mxu0 %v1159_v0  ;;  %v1004_v0 = vld [vmem:[#allocation4 + $0x4] ss:$16 sps:$4 sm:$0xff]  }
  0x50   :  { %942 = vmatpush3.bf16.xpose.msra.mxu0 %v941_v25 }
  0x51   :  { %600 = vmatprep.subr.bf16.mxu0 %v1004_v0 }
  0x57   :  { %882 = vmatmul.mubr.f32.vlgmr.msra.gmra.mrb[0].mxu0 %v81_v26 }
  0x58   :  { %632 = vmatprep.mubr.bf16.mxu0 %v1162_v50  ;;  %601 = vmatpush1.bf16.msra.mxu0 %v1002_v2 }
  0x59   :  { %602 = vmatprep.subr.bf16.mxu0 %v1010_v4 }
  0x5c   :  { %603 = vmatpush1.bf16.msra.mxu0 %v1008_v5 }
  0x5d   :  { %604 = vmatprep.subr.bf16.mxu0 %v1016_v8 }
  0x60   :  { %605 = vmatpush1.bf16.msra.mxu0 %v1014_v10 }
  0x61   :  { %606 = vmatprep.subr.bf16.mxu0 %v1022_v12 }
  0x64   :  { %607 = vmatpush1.bf16.msra.mxu0 %v1020_v14 }
 0x12a   :  { %v148_v29 = vpop.f32.mrb[0].mxu0 }
 0x12b   :  { %v155_v30 = vsel %vm154_vm1, %v148_v29, -1e+30  ;;  %v883_v31 = vpop.f32.mrb[1].mxu0 }
 0x12c   :  { %v157_v32 = vsel %vm156_vm2, %v155_v30, -inf  ;;  %v361_v31 = vsub.s32 3, %v1357_v16 }
 0x12d   :  { %158 = vmax.xlane.f32.xlu0 %v157_v32 }
 0x1ba   :  { %v159_v33 = vpop.xlane.xlu0 %158 }
 0x1bb   :  { %v160_v34 = vsub.f32 %v155_v30, %v159_v33  ;;  %v357_v30 = vsub.s32 2, %v1357_v16  ;;  %v362_v33 = vrot.slane %v265_v18, %v361_v31 }
 0x1bd   :  { %v161_v35 = vmul.f32 1.442695, %v160_v34  ;;  %v358_v32 = vrot.slane %v265_v18, %v357_v30 }
 0x1bf   :  { %1026 = vpow2.f32 %v161_v35 }
 0x1c9   :  { %v1027_v36 = vpop.eup %1026 }
 0x1ca   :  { %v163_v37 = vsel %vm156_vm2, %v1027_v36, 0.0 }
 0x1cb   :  { %164 = vadd.xlane.f32.xlu0 %v163_v37 }
 0x258   :  { %v165_v38 = vpop.xlane.xlu0 %164 }
 0x259   :  { %1028 = vrcp.f32 %v165_v38 }
 0x263   :  { %v1029_v39 = vpop.eup %1028 }
 0x264   :  { %v167_v40 = vmul.f32 %v1029_v39, %v1027_v36 }
 0x266   :  { %917 = vmatmul.mubr.f32.vlgmr.msra.gmra.mrb[0].mxu1 %v167_v40  ;;  %168 = vst [vmem:[#allocation8] sm:$0x1] %v167_v40 }
 0x267   :  { %371 = vmatpush1.bf16.msra.mxu1 %v978_v41  ;;  %402 = vmatprep.mubr.bf16.mxu1 %v1162_v50 }
 0x268   :  { %372 = vmatprep.subr.bf16.mxu1 %v983_v43 }
 0x26b   :  { %373 = vmatpush1.bf16.msra.mxu1 %v981_v44 }
 0x26c   :  { %374 = vmatprep.subr.bf16.mxu1 %v986_v45  ;;  %v241_v45 = vld [vmem:[%s1451_s3] sm:$0x1] }
 0x26f   :  { %375 = vmatpush1.bf16.msra.mxu1 %v984_v46 }
 0x270   :  { %376 = vmatprep.subr.bf16.mxu1 %v989_v47 }
 0x273   :  { %377 = vmatpush1.bf16.msra.mxu1 %v987_v48 }
 0x274   :  { %411 = vmatprep.subr.bf16.mxu1 %v992_v49 }
 0x339   :  { %v235_v51 = vpop.f32.mrb[0].mxu1 }
 0x33a   :  { %v239_v52 = vpack.c.bf16 %v235_v51, %v235_v51  ;;  %v918_v53 = vpop.f32.mrb[1].mxu1 }
 0x33c   :  { %243 = vrot.lane.b32.xlu1 %v239_v52, %s1163_s21  ;;  %s1164_s21 = smov [#allocation8]  }
 0x33d   :  { %s744_s22 = sshll.u32 %s1164_s21, 4  ;;  %s745_s22 = int_to_ptr.vmem [resolvable:$true] %s744_s22 }
 0x33e   :  { %s1084_s23 = scalar_lea.vmem %s745_s22, 16  ;;  %s1088_s24 = scalar_lea.vmem %s745_s22, 32 }
 0x33f   :  { %p1085_p9 = scmp.ne.s32.totalorder %s745_s22, %s1084_s23  ;;  %p1089_p10 = scmp.lt.s32.totalorder %s745_s22, %s745_s22 }
 0x340   :  { %p1090_p11 = scmp.lt.s32.totalorder %s1088_s24, %s1084_s23 }
 0x342   :  { %p1091_p12 = por %p1090_p11, %p1089_p10 }
 0x344   :  { %p1092_p13 = pnand %p1091_p12, %p1085_p9 }
 0x3ae   :  { %v1332_v56 = vpop.permute.xlu1 %243 }
 0x3af   :  { %v248_v58 = vsel %vm245_vm3, %v240_v54, %v1332_v56 }
 0x3b0   :  { %789 = vmatmul.mubr.msk.bf16.vlgmr.msra.gmra.mrb[4].mxu1 %vm367_vm4, %v248_v58 }
 0x3b1   :  { %412 = vmatpush1.bf16.msra.mxu1 %v990_v55  ;;  %443 = vmatprep.mubr.bf16.mxu1 %v1162_v50 }
 0x3b2   :  { %413 = vmatprep.subr.bf16.mxu1 %v995_v57 }
 0x3b5   :  { %414 = vmatpush1.bf16.msra.mxu1 %v993_v59 }
 0x3b6   :  { %415 = vmatprep.subr.bf16.mxu1 %v998_v60 }
 0x3b9   :  { %416 = vmatpush1.bf16.msra.mxu1 %v996_v61 }
 0x3ba   :  { %417 = vmatprep.subr.bf16.mxu1 %v1001_v62 }
 0x3bd   :  { %418 = vmatpush1.bf16.msra.mxu1 %v999_v63 }
 0x3be   :  { %641 = vmatprep.subr.bf16.mxu1 %v1007_v1 }
 0x3c0   :  { %790 = vmatmul.mubr.msk.bf16.vlgmr.msra.gmra.mrb[8].mxu1 %vm367_vm4, %v248_v58 }
 0x3c1   :  { %673 = vmatprep.mubr.bf16.mxu1 %v1162_v50  ;;  %642 = vmatpush1.bf16.msra.mxu1 %v1005_v3 }
 0x3c2   :  { %643 = vmatprep.subr.bf16.mxu1 %v1013_v7 }
 0x3c5   :  { %644 = vmatpush1.bf16.msra.mxu1 %v1011_v6 }
 0x3c6   :  { %645 = vmatprep.subr.bf16.mxu1 %v1019_v9 }
 0x3c9   :  { %646 = vmatpush1.bf16.msra.mxu1 %v1017_v11 }
 0x3ca   :  { %647 = vmatprep.subr.bf16.mxu1 %v1025_v13 }
 0x3cd   :  { %648 = vmatpush1.bf16.msra.mxu1 %v1023_v15 }
 0x483   :  { %v404_v22 = vpop.f32.mrb[4].mxu1 }
 0x484   :  { %v405_v23 = vadd.f32 %v404_v22, %v350_v20  ;;  %v406_v24 = vpop.f32.mrb[5].mxu1 }
 0x485   :  { %v407_v25 = vadd.f32 %v406_v24, %v354_v21  ;;  %v408_v26 = vpop.f32.mrb[6].mxu1 }
 0x486   :  { %v791_v27 = vmul.f32 -1.442695, %v405_v23  ;;  %v409_v28 = vpop.f32.mrb[7].mxu1 }
 0x487   :  { %v792_v29 = vmul.f32 -1.442695, %v407_v25 }
 0x488   :  { %1030 = vpow2.f32 %v791_v27 }
 0x489   :  { %1032 = vpow2.f32 %v792_v29 }
 0x492   :  { %v1031_v34 = vpop.eup %1030 }
 0x493   :  { %v1033_v35 = vpop.eup %1032  ;;  %v455_v36 = vadd.f32 1.0, %v1031_v34  ;;  %v445_v37 = vpop.f32.mrb[8].mxu1 }
 0x494   :  { %v461_v38 = vadd.f32 1.0, %v1033_v35  ;;  %v446_v39 = vadd.f32 %v445_v37, %v358_v32  ;;  %v447_v40 = vpop.f32.mrb[9].mxu1 }
 0x495   :  { %1034 = vrcp.f32 %v455_v36  ;;  %v448_v41 = vadd.f32 %v447_v40, %v362_v33  ;;  %v449_v42 = vpop.f32.mrb[10].mxu1 }
 0x496   :  { %1036 = vrcp.f32 %v461_v38  ;;  %v450_v43 = vpop.f32.mrb[11].mxu1 }
 0x497   :  { %1038 = vtanh.f32 %v446_v39  ;;  %v793_v44 = vmul.f32 -1.442695, %v448_v41 }
 0x499   :  { %1040 = vpow2.f32 %v793_v44 }
 0x49f   :  { %v1035_v46 = vpop.eup %1034 }
 0x4a0   :  { %v1037_v47 = vpop.eup %1036 }
 0x4a1   :  { %v1039_v48 = vpop.eup %1038  ;;  %v471_v49 = vmul.f32 %v1037_v47, %v241_v45 }
 0x4a2   :  { %v472_v50 = vmul.f32 %v1039_v48, %v1035_v46 }
 0x4a3   :  { %v1041_v51 = vpop.eup %1040 }
 0x4a4   :  { %v1377_v52 = vadd.f32 %v472_v50, %v471_v49  ;;  %v468_v53 = vadd.f32 1.0, %v1041_v51 }
 0x4a6   :  { %1042 = vtanh.f32 %v1377_v52 }
 0x4a7   :  { %1044 = vrcp.f32 %v468_v53 }
 0x4b0   :  { %v1043_v54 = vpop.eup %1042 }
 0x4b1   :  { %v1045_v55 = vpop.eup %1044 }
 0x4b2   :  { %v1380_v57 = vmul.f32 %v1045_v55, %v1043_v54 }
 0x4b4   :  { %v476_v58 = vpack.c.bf16 %v1380_v57, %v1380_v57 }
 0x4b6   :  { %v479_v59 = vsel %vm245_vm3, %v476_v58, %v1332_v56 }
 0x4b7   :  { %810 = vmatmul.mubr.msk.bf16.vlgmr.msra.gmra.mrb[4].mxu0 %vm367_vm4, %v479_v59  ;;  %811 = vmatmul.mubr.msk.bf16.vlgmr.msra.gmra.mrb[12].mxu1 %vm367_vm4, %v479_v59 }
 0x4b8   :  { %1095 = shalt.err (!%p1092_p13)
}
 0x4b9   :  { %s1096_s25 = scalar_lea.hbm %s1458_s10, 16 }
 0x4ba   :  { %p1097_p0 = scmp.ne.s32.totalorder %s1458_s10, %s1096_s25  ;;  %p1100_p1 = scmp.lt.u32.totalorder %s1096_s25, %s1458_s10 }
 0x4bc   :  { %p1102_p2 = pnand %p1100_p1, %p1097_p0 }
 0x4be   :  { %1105 = shalt.err (!%p1102_p2)
}
 0x4bf   :  { %747 = dma.vmem_to_hbm [thread:$0]  %s745_s22, 16, %s1458_s10, [#allocation9]   ;;  %v496_v56 = vld [vmem:[%s1456_s8] sm:$0xf]  ;;  %vm722_vm5 = vcmask 253952   ;;  %vm716_vm8 = vcmask 1041408  }
 0x4c0   :  { %v581_v60 = vrot.slane %v496_v56, %v349_v17  ;;  %v585_v61 = vrot.slane %v496_v56, %v353_v19  ;;  %v593_v10 = vrot.slane %v496_v56, %v361_v31  ;;  %v589_v12 = vrot.slane %v496_v56, %v357_v30  ;;  %v477_v22 = vld [vmem:[%s1451_s3 + $0x1] sm:$0x1]  ;;  %s1165_s13 = smov [#allocation10]   ;;  %v725_v31 = vld [vmem:[#allocation10] sm:$0x1]  ;;  %s1166_s3 = smov [#allocation7]  }
 0x4c1   :  { %vm723_vm6 = vsmask.f32 256  ;;  %s754_s14 = sshll.u32 %s1165_s13, 4  ;;  %s734_s15 = sshll.u32 %s1166_s3, 4  ;;  %v710_v34 = vrot.slane %v1377_v52, 6  ;;  %vm718_vm9 = vcmask 1042432   ;;  %s755_s14 = int_to_ptr.vmem [resolvable:$true] %s754_s14  ;;  %s1417_s15 = int_to_ptr.vmem [resolvable:$true] %s734_s15 }
 0x4c2   :  { %vm724_vm7 = vmand %vm722_vm5, %vm723_vm6  ;;  %s1106_s16 = scalar_lea.vmem %s755_s14, 16  ;;  %s1110_s7 = scalar_lea.vmem %s755_s14, 32 }
 0x4c3   :  { %p1107_p3 = scmp.ne.s32.totalorder %s755_s14, %s1106_s16  ;;  %p1111_p4 = scmp.lt.s32.totalorder %s755_s14, %s755_s14 }
 0x4c4   :  { %p1112_p5 = scmp.lt.s32.totalorder %s1110_s7, %s1106_s16 }
 0x4c6   :  { %p1113_p6 = por %p1112_p5, %p1111_p4 }
 0x4c8   :  { %p1114_p7 = pnand %p1113_p6, %p1107_p3 }
 0x58a   :  { %v634_v62 = vpop.f32.mrb[4].mxu0  ;;  %v675_v63 = vpop.f32.mrb[12].mxu1 }
 0x58b   :  { %v635_v0 = vadd.f32 %v634_v62, %v581_v60  ;;  %v636_v1 = vpop.f32.mrb[5].mxu0  ;;  %v677_v2 = vpop.f32.mrb[13].mxu1  ;;  %v676_v14 = vadd.f32 %v675_v63, %v589_v12 }
 0x58c   :  { %v637_v3 = vadd.f32 %v636_v1, %v585_v61  ;;  %v638_v4 = vpop.f32.mrb[6].mxu0  ;;  %v679_v5 = vpop.f32.mrb[14].mxu1  ;;  %v678_v11 = vadd.f32 %v677_v2, %v593_v10 }
 0x58d   :  { %v812_v6 = vmul.f32 -1.442695, %v635_v0  ;;  %v639_v7 = vpop.f32.mrb[7].mxu0  ;;  %v680_v8 = vpop.f32.mrb[15].mxu1 }
 0x58e   :  { %v813_v9 = vmul.f32 -1.442695, %v637_v3  ;;  %v814_v13 = vmul.f32 -1.442695, %v678_v11 }
 0x58f   :  { %1046 = vpow2.f32 %v812_v6 }
 0x590   :  { %1048 = vpow2.f32 %v813_v9 }
 0x591   :  { %1050 = vpow2.f32 %v814_v13 }
 0x592   :  { %1052 = vtanh.f32 %v676_v14 }
 0x599   :  { %v1047_v15 = vpop.eup %1046 }
 0x59a   :  { %v1049_v17 = vpop.eup %1048  ;;  %v685_v18 = vadd.f32 1.0, %v1047_v15 }
 0x59b   :  { %v691_v19 = vadd.f32 1.0, %v1049_v17  ;;  %v1051_v20 = vpop.eup %1050 }
 0x59c   :  { %1054 = vrcp.f32 %v685_v18  ;;  %v1053_v21 = vpop.eup %1052  ;;  %v698_v16 = vadd.f32 1.0, %v1051_v20 }
 0x59d   :  { %1056 = vrcp.f32 %v691_v19 }
 0x59e   :  { %1058 = vrcp.f32 %v698_v16 }
 0x5a6   :  { %v1055_v23 = vpop.eup %1054 }
 0x5a7   :  { %v1057_v24 = vpop.eup %1056  ;;  %v702_v25 = vmul.f32 %v1055_v23, %v1053_v21 }
 0x5a8   :  { %v701_v26 = vmul.f32 %v1057_v24, %v477_v22  ;;  %v1059_v28 = vpop.eup %1058 }
 0x5aa   :  { %v703_v27 = vadd.f32 %v702_v25, %v701_v26 }
 0x5ac   :  { %1060 = vtanh.f32 %v703_v27  ;;  %v713_v35 = vrot.slane %v703_v27, 5 }
 0x5b6   :  { %v1061_v29 = vpop.eup %1060 }
 0x5b7   :  { %v705_v30 = vmul.f32 %v1061_v29, %v1059_v28 }
 0x5b9   :  { %v707_v32 = vrot.slane %v705_v30, 7  ;;  %v721_v33 = vpack.c.bf16 %v705_v30, %v705_v30 }
 0x5bb   :  { %v715_v36 = vsel %vm156_vm2, %v1380_v57, %v707_v32  ;;  %v726_v37 = vsel %vm724_vm7, %v721_v33, %v725_v31 }
 0x5bc   :  { %v717_v38 = vsel %vm716_vm8, %v715_v36, %v710_v34  ;;  %727 = vst [vmem:[#allocation10] sm:$0x1] %v726_v37 }
 0x5bd   :  { %v719_v39 = vsel %vm718_vm9, %v717_v38, %v713_v35 }
 0x5be   :  { %1117 = shalt.err (!%p1114_p7)
}
 0x5bf   :  { %s1118_s5 = scalar_lea.hbm %s1459_s11, 16 }
 0x5c0   :  { %p1119_p8 = scmp.ne.s32.totalorder %s1459_s11, %s1118_s5  ;;  %p1122_p9 = scmp.lt.u32.totalorder %s1118_s5, %s1459_s11 }
 0x5c2   :  { %p1124_p10 = pnand %p1122_p9, %p1119_p8 }
 0x5c4   :  { %1127 = shalt.err (!%p1124_p10)
}
 0x5c5   :  { %757 = dma.vmem_to_hbm [thread:$0]  %s755_s14, 16, %s1459_s11, [#allocation9]   ;;  %720 = vst [vmem:[#allocation7] sm:$0xf] %v719_v39 }
 0x5c6   :  { %s1128_s24 = scalar_lea.vmem %s1417_s15, 64  ;;  %p1133_p12 = scmp.lt.s32.totalorder %s1417_s15, %s1417_s15 }
 0x5c7   :  { %p1129_p11 = scmp.ne.s32.totalorder %s1417_s15, %s1128_s24  ;;  %p1134_p13 = scmp.lt.s32.totalorder %s1128_s24, %s1128_s24 }
 0x5c9   :  { %p1135_p0 = por %p1134_p13, %p1133_p12 }
 0x5cb   :  { %p1136_p1 = pnand %p1135_p0, %p1129_p11 }
 0x5cd   :  { %1139 = shalt.err (!%p1136_p1)
}
 0x5ce   :  { %s1140_s25 = scalar_lea.hbm %s1457_s9, 64 }
 0x5cf   :  { %p1141_p2 = scmp.ne.s32.totalorder %s1457_s9, %s1140_s25  ;;  %p1144_p3 = scmp.lt.u32.totalorder %s1140_s25, %s1457_s9 }
 0x5d1   :  { %p1146_p4 = pnand %p1144_p3, %p1141_p2 }
 0x5d3   :  { %1149 = shalt.err (!%p1146_p4)
}
 0x5d4   :  { %737 = dma.vmem_to_hbm [thread:$0]  %s1417_s15, 64, %s1457_s9, [#allocation6]  }
 0x5d5   :  { %1152 = dma.done.wait [#allocation6], 64  }
 0x5d6   :  { %1153 = vsyncadd [#allocation6], 4294967232 }
 0x5d7   :  { %1154 = dma.done.wait [#allocation9], 32  }
 0x5d8   :  { %1155 = vsyncadd [#allocation9], 4294967264 }
 0x5d9   :  { %767 = vsyncpa [#allocation5], 1 }
 0x5da   :  { %768 = vsyncpa [#allocation6], 1 }
 0x5db   :  { %769 = vsyncpa [#allocation9], 1 }

</bundles_post_ra>
